<compile_context>
chip_gen: v5e
topology: v5e:2x2
jax: 0.10.0
libtpu: 0.0.40
codegen_flags: <defaults>
</compile_context>

<pallas_src>
import jax
import jax.numpy as jnp
from jax.experimental import pallas as pl
from jax.experimental.pallas import tpu as pltpu


def _round_up(x, m):
    return ((x + m - 1) // m) * m


def _mlp_kernel(x_ref, w1_ref, b1_ref, w2_ref, b2_ref, w3_ref, b3_ref, o_ref):
    # In-kernel cast to bf16 (MXU operand dtype); accumulate in f32.
    x = x_ref[...].astype(jnp.bfloat16)
    # layer 1: bf16 matmul on the MXU, f32 accumulation; bias + ReLU in f32.
    h1 = jnp.dot(x, w1_ref[...], preferred_element_type=jnp.float32)
    h1 = jnp.maximum(h1 + b1_ref[...], 0.0)
    # layer 2
    h2 = jnp.dot(h1.astype(jnp.bfloat16), w2_ref[...],
                 preferred_element_type=jnp.float32)
    h2 = jnp.maximum(h2 + b2_ref[...], 0.0)
    # output layer (no activation)
    out = jnp.dot(h2.astype(jnp.bfloat16), w3_ref[...],
                  preferred_element_type=jnp.float32) + b3_ref[...]
    o_ref[...] = out.astype(o_ref.dtype)


def _choose_batch_tile(B, batch_tile):
    # Tiny batches: a single step (can't usefully split < 16 rows).
    if B <= 16:
        return _round_up(B, 8)
    # Small/medium batches: aim for >= 2 grid steps so v7x's two TensorCores
    # both get work; keep the tile sublane-aligned to 16 rows so the bf16
    # matmul operand packs cleanly (16 rows per bf16 vreg).
    if B <= 2 * batch_tile:
        return min(batch_tile, _round_up(pl.cdiv(B, 2), 16))
    return batch_tile


def trainer_team_rec_forward(state, params, *, batch_tile=1024):
    """Fused forward pass of TrainerTeamRec.

    state : (B, num_input_dims) float32
    params: dict with w1 (D,L1), b1 (1,L1), w2 (L1,L2), b2 (1,L2),
            w3 (L2,A), b3 (1,A)  (weights stored as (in, out), i.e. transposed
            vs. PyTorch nn.Linear.weight)
    returns (B, A) float32
    """
    w1, b1 = params["w1"], params["b1"]
    w2, b2 = params["w2"], params["b2"]
    w3, b3 = params["w3"], params["b3"]

    B, D = state.shape
    L1 = w1.shape[1]
    L2 = w2.shape[1]
    A = w3.shape[1]

    TB = _choose_batch_tile(B, batch_tile)
    n_steps = pl.cdiv(B, TB)

    # bf16 weights for the MXU (tiny, one-time cast); biases stay f32 and are
    # added in the f32 accumulator inside the kernel. The (large) activation
    # tensor `state` is NOT touched in the wrapper: no pad, no cast, no
    # extra HBM passes.
    w1c = w1.astype(jnp.bfloat16)
    w2c = w2.astype(jnp.bfloat16)
    w3c = w3.astype(jnp.bfloat16)
    b1c = b1.astype(jnp.float32)
    b2c = b2.astype(jnp.float32)
    b3c = b3.astype(jnp.float32)

    def resident(arr):
        # Weights/biases: same block every grid step -> stays VMEM-resident.
        return pl.BlockSpec(arr.shape, lambda i: (0, 0))

    flops = 2 * B * (D * L1 + L1 * L2 + L2 * A)
    bytes_accessed = (
        state.size * state.dtype.itemsize
        + sum(a.size * a.dtype.itemsize for a in (w1c, w2c, w3c, b1c, b2c, b3c))
        + B * A * 4
    )

    out = pl.pallas_call(
        _mlp_kernel,
        out_shape=jax.ShapeDtypeStruct((B, A), jnp.float32),
        grid=(n_steps,),
        in_specs=[
            pl.BlockSpec((TB, D), lambda i: (i, 0)),
            resident(w1c), resident(b1c),
            resident(w2c), resident(b2c),
            resident(w3c), resident(b3c),
        ],
        out_specs=pl.BlockSpec((TB, A), lambda i: (i, 0)),
        compiler_params=pltpu.CompilerParams(
            dimension_semantics=("parallel",)),
        cost_estimate=pl.CostEstimate(
            flops=flops, bytes_accessed=bytes_accessed, transcendentals=0),
    )(state, w1c, b1c, w2c, b2c, w3c, b3c)

    return out


def init_params(key, num_input_dims, l1_dims, l2_dims, num_actions):
    """Deterministic init matching nn.Linear's U(-1/sqrt(fan_in), 1/sqrt(fan_in))."""
    ks = jax.random.split(key, 6)

    def linear(kw, kb, fan_in, fan_out):
        bound = 1.0 / jnp.sqrt(float(fan_in))
        w = jax.random.uniform(kw, (fan_in, fan_out), jnp.float32, -bound, bound)
        b = jax.random.uniform(kb, (1, fan_out), jnp.float32, -bound, bound)
        return w, b

    w1, b1 = linear(ks[0], ks[1], num_input_dims, l1_dims)
    w2, b2 = linear(ks[2], ks[3], l1_dims, l2_dims)
    w3, b3 = linear(ks[4], ks[5], l2_dims, num_actions)
    return {"w1": w1, "b1": b1, "w2": w2, "b2": b2, "w3": w3, "b3": b3}


# TODO(synk): the module's Adam optimizer / MSELoss are training-time only and
# are not part of the forward pass, so they are intentionally not translated.

if __name__ == "__main__":
    # Small shapes consistent with the module's forward: state (batch, num_input_dims)
    batch = 8
    num_input_dims = 32
    l1_dims = 64
    l2_dims = 64
    num_actions = 16

    key = jax.random.PRNGKey(0)
    k_params, k_state = jax.random.split(key)
    params = init_params(k_params, num_input_dims, l1_dims, l2_dims, num_actions)
    state = jax.random.normal(k_state, (batch, num_input_dims), jnp.float32)

    out = trainer_team_rec_forward(state, params)
    jax.block_until_ready(out)
    assert out.shape == (batch, num_actions)

    # Reference: same math with the same bf16-rounded matmul operands and f32
    # accumulation (so the comparison isolates kernel correctness, not bf16
    # quantization).
    def rq(a):  # round-trip through bf16 like the kernel operands
        return a.astype(jnp.bfloat16).astype(jnp.float32)

    def ref_forward(x):
        h1 = jnp.maximum(rq(x) @ rq(params["w1"]) + params["b1"], 0.0)
        h2 = jnp.maximum(rq(h1) @ rq(params["w2"]) + params["b2"], 0.0)
        return rq(h2) @ rq(params["w3"]) + params["b3"]

    ref = ref_forward(state)
    assert jnp.allclose(out, ref, atol=1e-2, rtol=1e-2), (
        f"max abs err = {jnp.max(jnp.abs(out - ref))}")

    # Second check: multi-step grid with a ragged boundary block (exercises the
    # cdiv grid + masked boundary writes path).
    big_batch = 100
    state2 = jax.random.normal(jax.random.PRNGKey(1),
                               (big_batch, num_input_dims), jnp.float32)
    out2 = trainer_team_rec_forward(state2, params)
    jax.block_until_ready(out2)
    assert out2.shape == (big_batch, num_actions)
    ref2 = ref_forward(state2)
    assert jnp.allclose(out2, ref2, atol=1e-2, rtol=1e-2), (
        f"max abs err (ragged) = {jnp.max(jnp.abs(out2 - ref2))}")

    print("KERNEL_OK")
</pallas_src>

<mosaic_0001>
module attributes {stable_mosaic.version = 11 : i64} {
  func.func @_mlp_kernel(%arg0: i32, %arg1: memref<8x32xf32, #tpu.memory_space<vmem>>, %arg2: memref<32x64xbf16, #tpu.memory_space<vmem>>, %arg3: memref<1x64xf32, #tpu.memory_space<vmem>>, %arg4: memref<64x64xbf16, #tpu.memory_space<vmem>>, %arg5: memref<1x64xf32, #tpu.memory_space<vmem>>, %arg6: memref<64x16xbf16, #tpu.memory_space<vmem>>, %arg7: memref<1x16xf32, #tpu.memory_space<vmem>>, %arg8: memref<8x16xf32, #tpu.memory_space<vmem>>) attributes {dimension_semantics = [#tpu.dimension_semantics<parallel>], iteration_bounds = array<i64: 1>, scalar_prefetch = 0 : i64, scratch_operands = 0 : i64, tpu.core_type = #tpu.core_type<tc>, window_params = [{transform_indices = @transform_0, window_bounds = array<i64: 8, 32>}, {pipeline_mode = #tpu.pipeline_mode<synchronous>, transform_indices = @transform_1, window_bounds = array<i64: 32, 64>}, {pipeline_mode = #tpu.pipeline_mode<synchronous>, transform_indices = @transform_2, window_bounds = array<i64: 1, 64>}, {pipeline_mode = #tpu.pipeline_mode<synchronous>, transform_indices = @transform_3, window_bounds = array<i64: 64, 64>}, {pipeline_mode = #tpu.pipeline_mode<synchronous>, transform_indices = @transform_4, window_bounds = array<i64: 1, 64>}, {pipeline_mode = #tpu.pipeline_mode<synchronous>, transform_indices = @transform_5, window_bounds = array<i64: 64, 16>}, {pipeline_mode = #tpu.pipeline_mode<synchronous>, transform_indices = @transform_6, window_bounds = array<i64: 1, 16>}, {transform_indices = @transform_7, window_bounds = array<i64: 8, 16>}]} {
    %c0 = arith.constant 0 : index
    %c0_0 = arith.constant 0 : index
    %0 = vector.load %arg1[%c0, %c0_0] : memref<8x32xf32, #tpu.memory_space<vmem>>, vector<8x32xf32>
    %1 = arith.truncf %0 : vector<8x32xf32> to vector<8x32xbf16>
    %c0_1 = arith.constant 0 : index
    %c0_2 = arith.constant 0 : index
    %2 = vector.load %arg2[%c0_1, %c0_2] : memref<32x64xbf16, #tpu.memory_space<vmem>>, vector<32x64xbf16>
    %cst = arith.constant dense<0.000000e+00> : vector<8x64xf32>
    %3 = tpu.matmul %1, %2, %cst {dimension_numbers = #tpu.dot_dimension_numbers<[1], [0], [0], [1], [0, 0, 1, 1], [], []>} : vector<8x32xbf16>, vector<32x64xbf16>, vector<8x64xf32> -> vector<8x64xf32>
    %c0_3 = arith.constant 0 : index
    %c0_4 = arith.constant 0 : index
    %4 = vector.load %arg3[%c0_3, %c0_4] : memref<1x64xf32, #tpu.memory_space<vmem>>, vector<1x64xf32>
    %5 = vector.broadcast %4 : vector<1x64xf32> to vector<8x64xf32>
    %6 = arith.addf %3, %5 : vector<8x64xf32>
    %cst_5 = arith.constant 0.000000e+00 : f32
    %7 = vector.broadcast %cst_5 : f32 to vector<8x64xf32>
    %8 = arith.maximumf %6, %7 : vector<8x64xf32>
    %9 = arith.truncf %8 : vector<8x64xf32> to vector<8x64xbf16>
    %c0_6 = arith.constant 0 : index
    %c0_7 = arith.constant 0 : index
    %10 = vector.load %arg4[%c0_6, %c0_7] : memref<64x64xbf16, #tpu.memory_space<vmem>>, vector<64x64xbf16>
    %cst_8 = arith.constant dense<0.000000e+00> : vector<8x64xf32>
    %11 = tpu.matmul %9, %10, %cst_8 {dimension_numbers = #tpu.dot_dimension_numbers<[1], [0], [0], [1], [0, 0, 1, 1], [], []>} : vector<8x64xbf16>, vector<64x64xbf16>, vector<8x64xf32> -> vector<8x64xf32>
    %c0_9 = arith.constant 0 : index
    %c0_10 = arith.constant 0 : index
    %12 = vector.load %arg5[%c0_9, %c0_10] : memref<1x64xf32, #tpu.memory_space<vmem>>, vector<1x64xf32>
    %13 = vector.broadcast %12 : vector<1x64xf32> to vector<8x64xf32>
    %14 = arith.addf %11, %13 : vector<8x64xf32>
    %cst_11 = arith.constant 0.000000e+00 : f32
    %15 = vector.broadcast %cst_11 : f32 to vector<8x64xf32>
    %16 = arith.maximumf %14, %15 : vector<8x64xf32>
    %17 = arith.truncf %16 : vector<8x64xf32> to vector<8x64xbf16>
    %c0_12 = arith.constant 0 : index
    %c0_13 = arith.constant 0 : index
    %18 = vector.load %arg6[%c0_12, %c0_13] : memref<64x16xbf16, #tpu.memory_space<vmem>>, vector<64x16xbf16>
    %cst_14 = arith.constant dense<0.000000e+00> : vector<8x16xf32>
    %19 = tpu.matmul %17, %18, %cst_14 {dimension_numbers = #tpu.dot_dimension_numbers<[1], [0], [0], [1], [0, 0, 1, 1], [], []>} : vector<8x64xbf16>, vector<64x16xbf16>, vector<8x16xf32> -> vector<8x16xf32>
    %c0_15 = arith.constant 0 : index
    %c0_16 = arith.constant 0 : index
    %20 = vector.load %arg7[%c0_15, %c0_16] : memref<1x16xf32, #tpu.memory_space<vmem>>, vector<1x16xf32>
    %21 = vector.broadcast %20 : vector<1x16xf32> to vector<8x16xf32>
    %22 = arith.addf %19, %21 : vector<8x16xf32>
    %c0_17 = arith.constant 0 : index
    %c0_18 = arith.constant 0 : index
    %23 = vector.load %arg8[%c0_17, %c0_18] : memref<8x16xf32, #tpu.memory_space<vmem>>, vector<8x16xf32>
    tpu.vector_store %arg8[%c0_17, %c0_18], %22 {strides = array<i32>} : memref<8x16xf32, #tpu.memory_space<vmem>>, vector<8x16xf32>,
    return
  }
  func.func @transform_0(%arg0: i32) -> (i32, i32) {
    %c0_i32 = arith.constant 0 : i32
    %c0_i32_0 = arith.constant 0 : i32
    return %arg0, %c0_i32 : i32, i32
  }
  func.func @transform_1(%arg0: i32) -> (i32, i32) {
    %c0_i32 = arith.constant 0 : i32
    %c0_i32_0 = arith.constant 0 : i32
    %c0_i32_1 = arith.constant 0 : i32
    return %c0_i32, %c0_i32_0 : i32, i32
  }
  func.func @transform_2(%arg0: i32) -> (i32, i32) {
    %c0_i32 = arith.constant 0 : i32
    %c0_i32_0 = arith.constant 0 : i32
    %c0_i32_1 = arith.constant 0 : i32
    return %c0_i32, %c0_i32_0 : i32, i32
  }
  func.func @transform_3(%arg0: i32) -> (i32, i32) {
    %c0_i32 = arith.constant 0 : i32
    %c0_i32_0 = arith.constant 0 : i32
    %c0_i32_1 = arith.constant 0 : i32
    return %c0_i32, %c0_i32_0 : i32, i32
  }
  func.func @transform_4(%arg0: i32) -> (i32, i32) {
    %c0_i32 = arith.constant 0 : i32
    %c0_i32_0 = arith.constant 0 : i32
    %c0_i32_1 = arith.constant 0 : i32
    return %c0_i32, %c0_i32_0 : i32, i32
  }
  func.func @transform_5(%arg0: i32) -> (i32, i32) {
    %c0_i32 = arith.constant 0 : i32
    %c0_i32_0 = arith.constant 0 : i32
    %c0_i32_1 = arith.constant 0 : i32
    return %c0_i32, %c0_i32_0 : i32, i32
  }
  func.func @transform_6(%arg0: i32) -> (i32, i32) {
    %c0_i32 = arith.constant 0 : i32
    %c0_i32_0 = arith.constant 0 : i32
    %c0_i32_1 = arith.constant 0 : i32
    return %c0_i32, %c0_i32_0 : i32, i32
  }
  func.func @transform_7(%arg0: i32) -> (i32, i32) {
    %c0_i32 = arith.constant 0 : i32
    %c0_i32_0 = arith.constant 0 : i32
    return %arg0, %c0_i32 : i32, i32
  }
}

</mosaic_0001>

<bundles_post_ra>
// kernel: tpu_custom_call.1
= control target key start
LH: loop header
LB: loop body
LE: loop exit
PB: predicated region body
PF: predicated region fallthrough
CT: control target
= control target key end

     0   :  { %12 = vsyncpa [#allocation3], 0  ;;  %s409_s0 = inlined_call_operand.vmem [shape: f32[8,32], index: 0, kind: input, shape index: {}]   ;;  %s410_s1 = inlined_call_operand.hbm [shape: bf16[32,64], index: 1, kind: input, shape index: {}]   ;;  %s411_s2 = inlined_call_operand.vmem [shape: f32[1,64], index: 2, kind: input, shape index: {}]   ;;  %s412_s3 = inlined_call_operand.vmem [shape: bf16[64,64], index: 3, kind: input, shape index: {}]   ;;  %s413_s4 = inlined_call_operand.vmem [shape: f32[1,64], index: 4, kind: input, shape index: {}]   ;;  %s414_s5 = inlined_call_operand.vmem [shape: bf16[64,16], index: 5, kind: input, shape index: {}]   ;;  %s415_s6 = inlined_call_operand.vmem [shape: f32[1,16], index: 6, kind: input, shape index: {}]   ;;  %s416_s7 = inlined_call_operand.hbm [shape: f32[8,16], index: 7, kind: output, shape index: {}]  }
   0x1   :  { %13 = vsyncpa [#allocation4], 0  ;;  %s20_s26 = sshll.u32 %s410_s1, 4  ;;  %s323_s27 = smov [#allocation2]   ;;  %s21_s26 = int_to_ptr.hbm [resolvable:$true] %s20_s26 }
   0x2   :  { %s22_s28 = sshll.u32 %s323_s27, 4  ;;  %s324_s29 = smov 64   ;;  %s23_s28 = int_to_ptr.vmem [resolvable:$true] %s22_s28 }
   0x3   :  { %s325_s30 = smov 4  }
   0x4   :  { %28 = dma.hbm_to_vmem [thread:$0]  %s21_s26, 256, %s23_s28, [#allocation3], %s324_s29, %s324_s29, %s325_s30  }
   0x5   :  { %319 = dma.done.wait [#allocation3], 256  }
   0x6   :  { %320 = vsyncadd [#allocation3], 4294967040  ;;  %v255_v0 = vld [vmem:[#allocation2 + $0x8] sm:$0xff]  ;;  %v254_v1 = vld [vmem:[#allocation2] sm:$0xff]  ;;  %vm66_vm0 = vcmask 261120   ;;  %vm121_vm1 = vcmask 523264  }
   0x7   :  { %v259_v2 = vld [vmem:[%s412_s3 + $0x18] sm:$0xff]  ;;  %76 = vmatpush.bf16.msra.mxu0 %v255_v0  ;;  %v44_v3 = vld [vmem:[%s409_s0] sm:$0xff]  ;;  %v258_v4 = vld [vmem:[%s412_s3 + $0x10] sm:$0xff]  ;;  %s326_s28 = smov [#allocation5]   ;;  %vm192_vm2 = vcmask 130048  }
   0x8   :  { %129 = vmatpush.bf16.msra.mxu1 %v259_v2  ;;  %v45_v5 = vpack.c.bf16 %v44_v3, %v44_v3  ;;  %v257_v6 = vld [vmem:[%s412_s3 + $0x8] sm:$0xff]  ;;  %v256_v7 = vld [vmem:[%s412_s3] sm:$0xff]  ;;  %v263_v8 = vld [vmem:[%s414_s5 + $0x18] sm:$0xff]  ;;  %s199_s29 = sshll.u32 %s326_s28, 4  ;;  %s200_s29 = int_to_ptr.vmem [resolvable:$true] %s199_s29 }
   0x9   :  { %183 = vmatpush.bf16.msra.mxu2 %v263_v8  ;;  %v262_v9 = vld [vmem:[%s414_s5 + $0x10] sm:$0xff]  ;;  %v268_v10 = vld [vmem:[%s411_s2] ss:$0 sm:$0xff]  ;;  %v261_v16 = vld [vmem:[%s414_s5 + $0x8] sm:$0xff] }
   0xa   :  { %v260_v17 = vld [vmem:[%s414_s5] sm:$0xff]  ;;  %s201_s5 = sshll.u32 %s416_s7, 4  ;;  %s202_s5 = int_to_ptr.hbm [resolvable:$true] %s201_s5 }
   0xb   :  { %77 = vmatpush.bf16.msra.mxu0 %v254_v1  ;;  %v269_v18 = vld [vmem:[%s413_s4] ss:$0 sm:$0xff] }
   0xc   :  { %130 = vmatpush.bf16.msra.mxu1 %v258_v4  ;;  %v270_v24 = vld [vmem:[%s415_s6] ss:$0 sm:$0xff] }
   0xd   :  { %184 = vmatpush.bf16.msra.mxu2 %v262_v9 }
   0xe   :  { %219 = vmatmul.msk.bf16.vlgmr.msra.gmra.mxu0 %vm66_vm0, %v45_v5 }
  0x10   :  { %131 = vmatpush.bf16.msra.mxu1 %v257_v6 }
  0x11   :  { %185 = vmatpush.bf16.msra.mxu2 %v261_v16 }
  0x14   :  { %132 = vmatpush.bf16.msra.mxu1 %v256_v7 }
  0x15   :  { %186 = vmatpush.bf16.msra.mxu2 %v260_v17 }
  0x8b   :  { %v79_v11 = vpop.f32.mrf.mxu0 }
  0x8c   :  { %v80_v12 = vadd.f32 %v268_v10, %v79_v11 }
  0x8e   :  { %v83_v13 = vmax.f32 %v80_v12, 0.0 }
  0x90   :  { %v84_v14 = vpack.c.bf16 %v83_v13, %v83_v13 }
  0x92   :  { %236 = vmatmul.msk.bf16.vlgmr.msra.gmra.mxu1 %vm121_vm1, %v84_v14 }
  0x93   :  { %v81_v15 = vpop.f32.mrf.mxu0 }
 0x10f   :  { %v134_v19 = vpop.f32.mrf.mxu1 }
 0x110   :  { %v135_v20 = vadd.f32 %v269_v18, %v134_v19 }
 0x112   :  { %v138_v21 = vmax.f32 %v135_v20, 0.0 }
 0x114   :  { %v139_v22 = vpack.c.bf16 %v138_v21, %v138_v21 }
 0x116   :  { %253 = vmatmul.msk.bf16.vlgmr.msra.gmra.mxu2 %vm121_vm1, %v139_v22 }
 0x117   :  { %v136_v23 = vpop.f32.mrf.mxu1 }
 0x199   :  { %v188_v25 = vpop.f32.mrf.mxu2 }
 0x19a   :  { %v189_v26 = vadd.f32 %v270_v24, %v188_v25 }
 0x19c   :  { %193 = vst.msk [vmem:[#allocation5] sm:$0xff] %vm192_vm2, %v189_v26 }
 0x19d   :  { %204 = dma.vmem_to_hbm [thread:$0]  %s200_s29, 128, %s202_s5, [#allocation4]  }
 0x1a1   :  { %v190_v27 = vpop.f32.mrf.mxu2 }
 0x1a2   :  { %321 = dma.done.wait [#allocation4], 128  }
 0x1a3   :  { %322 = vsyncadd [#allocation4], 4294967168 }
 0x1a4   :  { %209 = vsyncpa [#allocation3], 1 }
 0x1a5   :  { %210 = vsyncpa [#allocation4], 1 }

</bundles_post_ra>
